<compile_context>
chip_gen: v7x
topology: tpu7x:2x2x1
jax: 0.10.0
libtpu: 0.0.40
codegen_flags: <defaults>
</compile_context>

<pallas_src>
import math
import functools

import jax
import jax.numpy as jnp
from jax import lax
from jax.experimental import pallas as pl
from jax.experimental.pallas import tpu as pltpu


# -----------------------------------------------------------------------------
# Pallas kernel: one TransformerEncoderLayer, one batch element per grid step
# -----------------------------------------------------------------------------

def _layer_norm(t, g, b, eps=1e-5):
    mu = jnp.mean(t, axis=-1, keepdims=True)
    d = t - mu
    var = jnp.mean(d * d, axis=-1, keepdims=True)
    return d * lax.rsqrt(var + eps) * g + b


def encoder_layer_kernel(x_ref, mask_ref,
                         in_w_ref, in_b_ref, out_w_ref, out_b_ref,
                         w1_ref, b1_ref, w2_ref, b2_ref,
                         ln1_g_ref, ln1_b_ref, ln2_g_ref, ln2_b_ref,
                         y_ref, attn_ref, *, nhead, head_pad):
    """Per grid step (one batch element):

    x_ref    : (L, E)  f32 activations
    mask_ref : (L, L)  additive float mask (0 = keep, -1e30 = masked)
    in_w_ref : (E, nhead*3*HP) bf16, head-major [q_h | k_h | v_h] packing,
               each chunk lane-padded to HP (multiple of 128); scale folded
               into the q columns.
    out_w_ref: (nhead*HP, E) bf16, rows padded per head with zeros.
    y_ref    : (L, E)  output, attn_ref: (L, L) head-averaged weights.
    """
    L, E = x_ref.shape
    HP = head_pad
    bf16 = jnp.bfloat16

    x = x_ref[...]                                                    # (L, E) f32
    neg = mask_ref[...]                                               # (L, L) f32

    # ---- fused QKV projection (bf16 MXU, f32 accumulate) ----
    qkv = jnp.dot(x.astype(bf16), in_w_ref[...],
                  preferred_element_type=jnp.float32) + in_b_ref[...]  # (L, 3*nhead*HP)

    # ---- multi-head self attention; per-head accumulation into out-proj ----
    attn_sum = jnp.zeros((L, L), jnp.float32)
    src2 = jnp.zeros((L, E), jnp.float32)
    for h in range(nhead):                       # static, small; unrolled
        base = h * 3 * HP                        # lane-tile aligned offsets
        q = qkv[:, base:base + HP].astype(bf16)              # (L, HP)
        k = qkv[:, base + HP:base + 2 * HP].astype(bf16)     # (L, HP)
        v = qkv[:, base + 2 * HP:base + 3 * HP].astype(bf16) # (L, HP)

        # scores: contract head dim of q and k (no in-kernel transpose).
        s = lax.dot_general(q, k, (((1,), (1,)), ((), ())),
                            preferred_element_type=jnp.float32) + neg  # (L, L)
        m = jnp.max(s, axis=-1, keepdims=True)
        e = jnp.exp(s - m)
        a = e * pl.reciprocal(jnp.sum(e, axis=-1, keepdims=True), approx=False)
        attn_sum = attn_sum + a

        ctx = jnp.dot(a.astype(bf16), v, preferred_element_type=jnp.float32)  # (L, HP)
        src2 = src2 + jnp.dot(ctx.astype(bf16),
                              out_w_ref[h * HP:(h + 1) * HP, :],
                              preferred_element_type=jnp.float32)             # (L, E)
    src2 = src2 + out_b_ref[...]

    attn_ref[...] = attn_sum * (1.0 / nhead)

    # ---- residual + LN1 (f32) ----
    src = _layer_norm(x + src2, ln1_g_ref[...], ln1_b_ref[...])

    # ---- feed-forward (ReLU) + residual + LN2 ----
    h1 = jnp.maximum(
        jnp.dot(src.astype(bf16), w1_ref[...],
                preferred_element_type=jnp.float32) + b1_ref[...], 0.0)
    ffn = jnp.dot(h1.astype(bf16), w2_ref[...],
                  preferred_element_type=jnp.float32) + b2_ref[...]
    y_ref[...] = _layer_norm(src + ffn, ln2_g_ref[...], ln2_b_ref[...])


# -----------------------------------------------------------------------------
# Parameter packing (once, outside the kernel)
# -----------------------------------------------------------------------------

def _round_up(v, m):
    return ((v + m - 1) // m) * m


def pack_params(p, nhead):
    """Pre-transpose / head-major-pack / bf16-cast PyTorch-layout weights."""
    E = p["out_proj_weight"].shape[0]
    hd = E // nhead
    HP = _round_up(hd, 128)                       # lane-aligned per-head chunk
    scale = 1.0 / math.sqrt(hd)

    wq, wk, wv = jnp.split(p["in_proj_weight"], 3, axis=0)   # (E, E), rows = out feats
    bq, bk, bv = jnp.split(p["in_proj_bias"], 3)
    wqT = (wq * scale).T                                      # fold softmax scale into Q
    wkT, wvT = wk.T, wv.T
    bq = bq * scale
    outT = p["out_proj_weight"].T                             # (E_ctx, E_out)

    in_w = jnp.zeros((E, nhead * 3 * HP), jnp.float32)
    in_b = jnp.zeros((nhead * 3 * HP,), jnp.float32)
    out_w = jnp.zeros((nhead * HP, E), jnp.float32)
    for h in range(nhead):
        base = h * 3 * HP
        sl = slice(h * hd, (h + 1) * hd)
        in_w = in_w.at[:, base:base + hd].set(wqT[:, sl])
        in_w = in_w.at[:, base + HP:base + HP + hd].set(wkT[:, sl])
        in_w = in_w.at[:, base + 2 * HP:base + 2 * HP + hd].set(wvT[:, sl])
        in_b = in_b.at[base:base + hd].set(bq[sl])
        in_b = in_b.at[base + HP:base + HP + hd].set(bk[sl])
        in_b = in_b.at[base + 2 * HP:base + 2 * HP + hd].set(bv[sl])
        out_w = out_w.at[h * HP:h * HP + hd, :].set(outT[sl, :])

    bf = jnp.bfloat16
    return {
        "in_w": in_w.astype(bf), "in_b": in_b[None, :],
        "out_w": out_w.astype(bf), "out_b": p["out_proj_bias"][None, :],
        "w1": p["linear1_weight"].T.astype(bf), "b1": p["linear1_bias"][None, :],
        "w2": p["linear2_weight"].T.astype(bf), "b2": p["linear2_bias"][None, :],
        "ln1_g": p["norm1_weight"][None, :], "ln1_b": p["norm1_bias"][None, :],
        "ln2_g": p["norm2_weight"][None, :], "ln2_b": p["norm2_bias"][None, :],
    }


# -----------------------------------------------------------------------------
# Wrapper
# -----------------------------------------------------------------------------

@functools.partial(jax.jit, static_argnames=("nhead",))
def transformer_encoder_layer(src, src_mask, key_padding_mask, packed, *, nhead):
    """TransformerEncoderLayer.forward (eval mode).

    src              : (L, B, E) float32
    src_mask         : (L, L) bool, True = not allowed to attend (or None)
    key_padding_mask : (B, L) bool, True = key is padding (or None)
    returns (out (L, B, E), attn (B, L, L) head-averaged)
    """
    L, B, E = src.shape
    hd = E // nhead
    HP = _round_up(hd, 128)

    masked = jnp.zeros((B, L, L), dtype=bool)
    if src_mask is not None:
        masked = masked | src_mask[None, :, :]
    if key_padding_mask is not None:
        masked = masked | key_padding_mask[:, None, :]
    # Additive mask; fully-masked rows yield a uniform attention row instead of
    # the NaNs PyTorch's -inf masking would produce.
    neg_mask = jnp.where(masked, -1e30, 0.0).astype(jnp.float32)

    x = jnp.transpose(src, (1, 0, 2))        # (B, L, E): batch leads for the grid

    kernel = functools.partial(encoder_layer_kernel, nhead=nhead, head_pad=HP)

    def resident(a):   # weights: constant block index -> stay in VMEM
        return pl.BlockSpec(a.shape, lambda b: (0,) * a.ndim)

    ins = [x, neg_mask,
           packed["in_w"], packed["in_b"], packed["out_w"], packed["out_b"],
           packed["w1"], packed["b1"], packed["w2"], packed["b2"],
           packed["ln1_g"], packed["ln1_b"], packed["ln2_g"], packed["ln2_b"]]
    in_specs = ([pl.BlockSpec((None, L, E), lambda b: (b, 0, 0)),     # x, per batch
                 pl.BlockSpec((None, L, L), lambda b: (b, 0, 0))]     # mask, per batch
                + [resident(a) for a in ins[2:]])

    y, attn = pl.pallas_call(
        kernel,
        grid=(B,),
        out_shape=(jax.ShapeDtypeStruct((B, L, E), jnp.float32),
                   jax.ShapeDtypeStruct((B, L, L), jnp.float32)),
        in_specs=in_specs,
        out_specs=(pl.BlockSpec((None, L, E), lambda b: (b, 0, 0)),
                   pl.BlockSpec((None, L, L), lambda b: (b, 0, 0))),
        compiler_params=pltpu.CompilerParams(
            dimension_semantics=("parallel",),          # megacore over batch (v7x)
            vmem_limit_bytes=48 * 1024 * 1024),          # fits v5e/v6e/v7x with headroom
    )(*ins)

    out = jnp.transpose(y, (1, 0, 2))                    # back to (L, B, E)
    return out, attn


# -----------------------------------------------------------------------------
# Pure-JAX reference (PyTorch semantics, f32) and parameter construction
# -----------------------------------------------------------------------------

def reference_encoder_layer(src, src_mask, key_padding_mask, p, *, nhead):
    L, B, E = src.shape
    hd = E // nhead
    qkv = jnp.einsum('lbe,fe->lbf', src, p["in_proj_weight"]) + p["in_proj_bias"]
    q, k, v = jnp.split(qkv, 3, axis=-1)
    q = q.reshape(L, B, nhead, hd).transpose(1, 2, 0, 3)    # (B, H, L, hd)
    k = k.reshape(L, B, nhead, hd).transpose(1, 2, 0, 3)
    v = v.reshape(L, B, nhead, hd).transpose(1, 2, 0, 3)
    s = jnp.einsum('bhld,bhmd->bhlm', q, k) / math.sqrt(hd)
    masked = jnp.zeros((B, L, L), bool)
    if src_mask is not None:
        masked = masked | src_mask[None]
    if key_padding_mask is not None:
        masked = masked | key_padding_mask[:, None, :]
    s = jnp.where(masked[:, None], -1e30, s)
    a = jax.nn.softmax(s, axis=-1)
    ctx = jnp.einsum('bhlm,bhmd->bhld', a, v).transpose(2, 0, 1, 3).reshape(L, B, E)
    src2 = jnp.einsum('lbe,fe->lbf', ctx, p["out_proj_weight"]) + p["out_proj_bias"]

    def ln(t, g, b):
        mu = t.mean(-1, keepdims=True)
        var = ((t - mu) ** 2).mean(-1, keepdims=True)
        return (t - mu) / jnp.sqrt(var + 1e-5) * g + b

    h = ln(src + src2, p["norm1_weight"], p["norm1_bias"])
    mid = jax.nn.relu(jnp.einsum('lbe,fe->lbf', h, p["linear1_weight"]) + p["linear1_bias"])
    ffn = jnp.einsum('lbe,fe->lbf', mid, p["linear2_weight"]) + p["linear2_bias"]
    out = ln(h + ffn, p["norm2_weight"], p["norm2_bias"])
    return out, a.mean(axis=1)


def init_params(key, d_model, dim_ff):
    def uni(k, shape, bound):
        return jax.random.uniform(k, shape, jnp.float32, -bound, bound)
    ks = iter(jax.random.split(key, 16))
    xb = 1.0 / math.sqrt(d_model)
    fb = 1.0 / math.sqrt(dim_ff)
    return {
        "in_proj_weight": uni(next(ks), (3 * d_model, d_model), xb),
        "in_proj_bias": uni(next(ks), (3 * d_model,), xb),
        "out_proj_weight": uni(next(ks), (d_model, d_model), xb),
        "out_proj_bias": uni(next(ks), (d_model,), xb),
        "linear1_weight": uni(next(ks), (dim_ff, d_model), xb),
        "linear1_bias": uni(next(ks), (dim_ff,), xb),
        "linear2_weight": uni(next(ks), (d_model, dim_ff), fb),
        "linear2_bias": uni(next(ks), (d_model,), fb),
        "norm1_weight": jnp.ones((d_model,), jnp.float32),
        "norm1_bias": jnp.zeros((d_model,), jnp.float32),
        "norm2_weight": jnp.ones((d_model,), jnp.float32),
        "norm2_bias": jnp.zeros((d_model,), jnp.float32),
    }


# -----------------------------------------------------------------------------
# Demo
# -----------------------------------------------------------------------------

if __name__ == "__main__":
    D_MODEL, NHEAD, DIM_FF = 32, 2, 64
    SEQ, BATCH = 8, 2

    root = jax.random.PRNGKey(0)
    k_src, k_par = jax.random.split(root)

    src = jax.random.normal(k_src, (SEQ, BATCH, D_MODEL), jnp.float32)

    # causal attn mask (True = masked) and key-padding mask (last 2 keys of batch 1 padded)
    src_mask = ~jnp.tril(jnp.ones((SEQ, SEQ), dtype=bool))
    key_padding_mask = jnp.zeros((BATCH, SEQ), dtype=bool).at[1, SEQ - 2:].set(True)

    params = init_params(k_par, D_MODEL, DIM_FF)
    packed = pack_params(params, NHEAD)

    out, attn = transformer_encoder_layer(src, src_mask, key_padding_mask,
                                          packed, nhead=NHEAD)
    jax.block_until_ready(out)
    jax.block_until_ready(attn)

    assert out.shape == (SEQ, BATCH, D_MODEL)
    assert attn.shape == (BATCH, SEQ, SEQ)
    assert not bool(jnp.any(jnp.isnan(out)))

    # parity vs. pure-f32 JAX reference (loose tol: kernel matmuls run in bf16 on the MXU)
    ref_out, ref_attn = reference_encoder_layer(src, src_mask, key_padding_mask,
                                                params, nhead=NHEAD)
    assert float(jnp.max(jnp.abs(out - ref_out))) < 1e-1
    assert float(jnp.max(jnp.abs(attn - ref_attn))) < 5e-2

    print("KERNEL_OK")
</pallas_src>

<mosaic_0001>
module attributes {stable_mosaic.version = 11 : i64} {
  func.func @encoder_layer_kernel(%arg0: i32, %arg1: memref<1x8x32xf32, #tpu.memory_space<vmem>>, %arg2: memref<1x8x8xf32, #tpu.memory_space<vmem>>, %arg3: memref<32x768xbf16, #tpu.memory_space<vmem>>, %arg4: memref<1x768xf32, #tpu.memory_space<vmem>>, %arg5: memref<256x32xbf16, #tpu.memory_space<vmem>>, %arg6: memref<1x32xf32, #tpu.memory_space<vmem>>, %arg7: memref<32x64xbf16, #tpu.memory_space<vmem>>, %arg8: memref<1x64xf32, #tpu.memory_space<vmem>>, %arg9: memref<64x32xbf16, #tpu.memory_space<vmem>>, %arg10: memref<1x32xf32, #tpu.memory_space<vmem>>, %arg11: memref<1x32xf32, #tpu.memory_space<vmem>>, %arg12: memref<1x32xf32, #tpu.memory_space<vmem>>, %arg13: memref<1x32xf32, #tpu.memory_space<vmem>>, %arg14: memref<1x32xf32, #tpu.memory_space<vmem>>, %arg15: memref<1x8x32xf32, #tpu.memory_space<vmem>>, %arg16: memref<1x8x8xf32, #tpu.memory_space<vmem>>) attributes {dimension_semantics = [#tpu.dimension_semantics<parallel>], iteration_bounds = array<i64: 2>, scalar_prefetch = 0 : i64, scratch_operands = 0 : i64, tpu.core_type = #tpu.core_type<tc>, window_params = [{transform_indices = @transform_0, window_bounds = array<i64: 1, 8, 32>}, {transform_indices = @transform_1, window_bounds = array<i64: 1, 8, 8>}, {pipeline_mode = #tpu.pipeline_mode<synchronous>, transform_indices = @transform_2, window_bounds = array<i64: 32, 768>}, {pipeline_mode = #tpu.pipeline_mode<synchronous>, transform_indices = @transform_3, window_bounds = array<i64: 1, 768>}, {pipeline_mode = #tpu.pipeline_mode<synchronous>, transform_indices = @transform_4, window_bounds = array<i64: 256, 32>}, {pipeline_mode = #tpu.pipeline_mode<synchronous>, transform_indices = @transform_5, window_bounds = array<i64: 1, 32>}, {pipeline_mode = #tpu.pipeline_mode<synchronous>, transform_indices = @transform_6, window_bounds = array<i64: 32, 64>}, {pipeline_mode = #tpu.pipeline_mode<synchronous>, transform_indices = @transform_7, window_bounds = array<i64: 1, 64>}, {pipeline_mode = #tpu.pipeline_mode<synchronous>, transform_indices = @transform_8, window_bounds = array<i64: 64, 32>}, {pipeline_mode = #tpu.pipeline_mode<synchronous>, transform_indices = @transform_9, window_bounds = array<i64: 1, 32>}, {pipeline_mode = #tpu.pipeline_mode<synchronous>, transform_indices = @transform_10, window_bounds = array<i64: 1, 32>}, {pipeline_mode = #tpu.pipeline_mode<synchronous>, transform_indices = @transform_11, window_bounds = array<i64: 1, 32>}, {pipeline_mode = #tpu.pipeline_mode<synchronous>, transform_indices = @transform_12, window_bounds = array<i64: 1, 32>}, {pipeline_mode = #tpu.pipeline_mode<synchronous>, transform_indices = @transform_13, window_bounds = array<i64: 1, 32>}, {transform_indices = @transform_14, window_bounds = array<i64: 1, 8, 32>}, {transform_indices = @transform_15, window_bounds = array<i64: 1, 8, 8>}]} {
    %c0 = arith.constant 0 : index
    %c0_0 = arith.constant 0 : index
    %c0_1 = arith.constant 0 : index
    %0 = vector.load %arg1[%c0, %c0_0, %c0_1] : memref<1x8x32xf32, #tpu.memory_space<vmem>>, vector<1x8x32xf32>
    %1 = vector.shape_cast %0 : vector<1x8x32xf32> to vector<8x32xf32>
    %c0_2 = arith.constant 0 : index
    %c0_3 = arith.constant 0 : index
    %c0_4 = arith.constant 0 : index
    %2 = vector.load %arg2[%c0_2, %c0_3, %c0_4] : memref<1x8x8xf32, #tpu.memory_space<vmem>>, vector<1x8x8xf32>
    %3 = vector.shape_cast %2 : vector<1x8x8xf32> to vector<8x8xf32>
    %4 = arith.truncf %1 : vector<8x32xf32> to vector<8x32xbf16>
    %c0_5 = arith.constant 0 : index
    %c0_6 = arith.constant 0 : index
    %5 = vector.load %arg3[%c0_5, %c0_6] : memref<32x768xbf16, #tpu.memory_space<vmem>>, vector<32x768xbf16>
    %cst = arith.constant dense<0.000000e+00> : vector<8x768xf32>
    %6 = tpu.matmul %4, %5, %cst {dimension_numbers = #tpu.dot_dimension_numbers<[1], [0], [0], [1], [0, 0, 1, 1], [], []>} : vector<8x32xbf16>, vector<32x768xbf16>, vector<8x768xf32> -> vector<8x768xf32>
    %c0_7 = arith.constant 0 : index
    %c0_8 = arith.constant 0 : index
    %7 = vector.load %arg4[%c0_7, %c0_8] : memref<1x768xf32, #tpu.memory_space<vmem>>, vector<1x768xf32>
    %8 = vector.broadcast %7 : vector<1x768xf32> to vector<8x768xf32>
    %9 = arith.addf %6, %8 : vector<8x768xf32>
    %cst_9 = arith.constant 0.000000e+00 : f32
    %10 = vector.broadcast %cst_9 : f32 to vector<8x8xf32>
    %cst_10 = arith.constant 0.000000e+00 : f32
    %11 = vector.broadcast %cst_10 : f32 to vector<8x32xf32>
    %12 = vector.extract_strided_slice %9 {offsets = [0, 0], sizes = [8, 128], strides = [1, 1]} : vector<8x768xf32> to vector<8x128xf32>
    %13 = arith.truncf %12 : vector<8x128xf32> to vector<8x128xbf16>
    %14 = vector.extract_strided_slice %9 {offsets = [0, 128], sizes = [8, 128], strides = [1, 1]} : vector<8x768xf32> to vector<8x128xf32>
    %15 = arith.truncf %14 : vector<8x128xf32> to vector<8x128xbf16>
    %16 = vector.extract_strided_slice %9 {offsets = [0, 256], sizes = [8, 128], strides = [1, 1]} : vector<8x768xf32> to vector<8x128xf32>
    %17 = arith.truncf %16 : vector<8x128xf32> to vector<8x128xbf16>
    %cst_11 = arith.constant dense<0.000000e+00> : vector<8x8xf32>
    %18 = tpu.matmul %13, %15, %cst_11 {dimension_numbers = #tpu.dot_dimension_numbers<[1], [1], [0], [0], [0, 0, 1, 0], [], []>} : vector<8x128xbf16>, vector<8x128xbf16>, vector<8x8xf32> -> vector<8x8xf32>
    %19 = arith.addf %18, %3 : vector<8x8xf32>
    %cst_12 = arith.constant dense<0xFF800000> : vector<8xf32>
    %20 = vector.multi_reduction <maximumf>, %19, %cst_12 [1] : vector<8x8xf32> to vector<8xf32>
    %21 = vector.shape_cast %20 : vector<8xf32> to vector<8x1xf32>
    %22 = vector.broadcast %21 : vector<8x1xf32> to vector<8x8xf32>
    %23 = arith.subf %19, %22 : vector<8x8xf32>
    %24 = math.exp %23 : vector<8x8xf32>
    %cst_13 = arith.constant dense<0.000000e+00> : vector<8xf32>
    %25 = vector.multi_reduction <add>, %24, %cst_13 [1] : vector<8x8xf32> to vector<8xf32>
    %26 = vector.shape_cast %25 : vector<8xf32> to vector<8x1xf32>
    %27 = tpu.reciprocal %26 : vector<8x1xf32> -> vector<8x1xf32>
    %28 = vector.broadcast %27 : vector<8x1xf32> to vector<8x8xf32>
    %29 = arith.mulf %24, %28 : vector<8x8xf32>
    %30 = arith.addf %10, %29 : vector<8x8xf32>
    %31 = arith.truncf %29 : vector<8x8xf32> to vector<8x8xbf16>
    %cst_14 = arith.constant dense<0.000000e+00> : vector<8x128xf32>
    %32 = tpu.matmul %31, %17, %cst_14 {dimension_numbers = #tpu.dot_dimension_numbers<[1], [0], [0], [1], [0, 0, 1, 1], [], []>} : vector<8x8xbf16>, vector<8x128xbf16>, vector<8x128xf32> -> vector<8x128xf32>
    %33 = arith.truncf %32 : vector<8x128xf32> to vector<8x128xbf16>
    %c0_15 = arith.constant 0 : index
    %c0_16 = arith.constant 0 : index
    %34 = vector.load %arg5[%c0_15, %c0_16] : memref<256x32xbf16, #tpu.memory_space<vmem>>, vector<128x32xbf16>
    %cst_17 = arith.constant dense<0.000000e+00> : vector<8x32xf32>
    %35 = tpu.matmul %33, %34, %cst_17 {dimension_numbers = #tpu.dot_dimension_numbers<[1], [0], [0], [1], [0, 0, 1, 1], [], []>} : vector<8x128xbf16>, vector<128x32xbf16>, vector<8x32xf32> -> vector<8x32xf32>
    %36 = arith.addf %11, %35 : vector<8x32xf32>
    %37 = vector.extract_strided_slice %9 {offsets = [0, 384], sizes = [8, 128], strides = [1, 1]} : vector<8x768xf32> to vector<8x128xf32>
    %38 = arith.truncf %37 : vector<8x128xf32> to vector<8x128xbf16>
    %39 = vector.extract_strided_slice %9 {offsets = [0, 512], sizes = [8, 128], strides = [1, 1]} : vector<8x768xf32> to vector<8x128xf32>
    %40 = arith.truncf %39 : vector<8x128xf32> to vector<8x128xbf16>
    %41 = vector.extract_strided_slice %9 {offsets = [0, 640], sizes = [8, 128], strides = [1, 1]} : vector<8x768xf32> to vector<8x128xf32>
    %42 = arith.truncf %41 : vector<8x128xf32> to vector<8x128xbf16>
    %cst_18 = arith.constant dense<0.000000e+00> : vector<8x8xf32>
    %43 = tpu.matmul %38, %40, %cst_18 {dimension_numbers = #tpu.dot_dimension_numbers<[1], [1], [0], [0], [0, 0, 1, 0], [], []>} : vector<8x128xbf16>, vector<8x128xbf16>, vector<8x8xf32> -> vector<8x8xf32>
    %44 = arith.addf %43, %3 : vector<8x8xf32>
    %cst_19 = arith.constant dense<0xFF800000> : vector<8xf32>
    %45 = vector.multi_reduction <maximumf>, %44, %cst_19 [1] : vector<8x8xf32> to vector<8xf32>
    %46 = vector.shape_cast %45 : vector<8xf32> to vector<8x1xf32>
    %47 = vector.broadcast %46 : vector<8x1xf32> to vector<8x8xf32>
    %48 = arith.subf %44, %47 : vector<8x8xf32>
    %49 = math.exp %48 : vector<8x8xf32>
    %cst_20 = arith.constant dense<0.000000e+00> : vector<8xf32>
    %50 = vector.multi_reduction <add>, %49, %cst_20 [1] : vector<8x8xf32> to vector<8xf32>
    %51 = vector.shape_cast %50 : vector<8xf32> to vector<8x1xf32>
    %52 = tpu.reciprocal %51 : vector<8x1xf32> -> vector<8x1xf32>
    %53 = vector.broadcast %52 : vector<8x1xf32> to vector<8x8xf32>
    %54 = arith.mulf %49, %53 : vector<8x8xf32>
    %55 = arith.addf %30, %54 : vector<8x8xf32>
    %56 = arith.truncf %54 : vector<8x8xf32> to vector<8x8xbf16>
    %cst_21 = arith.constant dense<0.000000e+00> : vector<8x128xf32>
    %57 = tpu.matmul %56, %42, %cst_21 {dimension_numbers = #tpu.dot_dimension_numbers<[1], [0], [0], [1], [0, 0, 1, 1], [], []>} : vector<8x8xbf16>, vector<8x128xbf16>, vector<8x128xf32> -> vector<8x128xf32>
    %58 = arith.truncf %57 : vector<8x128xf32> to vector<8x128xbf16>
    %c128 = arith.constant 128 : index
    %c0_22 = arith.constant 0 : index
    %59 = vector.load %arg5[%c128, %c0_22] : memref<256x32xbf16, #tpu.memory_space<vmem>>, vector<128x32xbf16>
    %cst_23 = arith.constant dense<0.000000e+00> : vector<8x32xf32>
    %60 = tpu.matmul %58, %59, %cst_23 {dimension_numbers = #tpu.dot_dimension_numbers<[1], [0], [0], [1], [0, 0, 1, 1], [], []>} : vector<8x128xbf16>, vector<128x32xbf16>, vector<8x32xf32> -> vector<8x32xf32>
    %61 = arith.addf %36, %60 : vector<8x32xf32>
    %c0_24 = arith.constant 0 : index
    %c0_25 = arith.constant 0 : index
    %62 = vector.load %arg6[%c0_24, %c0_25] : memref<1x32xf32, #tpu.memory_space<vmem>>, vector<1x32xf32>
    %63 = vector.broadcast %62 : vector<1x32xf32> to vector<8x32xf32>
    %64 = arith.addf %61, %63 : vector<8x32xf32>
    %cst_26 = arith.constant 5.000000e-01 : f32
    %65 = vector.broadcast %cst_26 : f32 to vector<8x8xf32>
    %66 = arith.mulf %55, %65 : vector<8x8xf32>
    %c0_27 = arith.constant 0 : index
    %c0_28 = arith.constant 0 : index
    %c0_29 = arith.constant 0 : index
    %67 = vector.load %arg16[%c0_27, %c0_28, %c0_29] : memref<1x8x8xf32, #tpu.memory_space<vmem>>, vector<1x8x8xf32>
    %68 = vector.shape_cast %67 : vector<1x8x8xf32> to vector<8x8xf32>
    %69 = vector.shape_cast %66 : vector<8x8xf32> to vector<1x8x8xf32>
    tpu.vector_store %arg16[%c0_27, %c0_28, %c0_29], %69 {strides = array<i32>} : memref<1x8x8xf32, #tpu.memory_space<vmem>>, vector<1x8x8xf32>,
    %70 = arith.addf %1, %64 : vector<8x32xf32>
    %c0_30 = arith.constant 0 : index
    %c0_31 = arith.constant 0 : index
    %71 = vector.load %arg11[%c0_30, %c0_31] : memref<1x32xf32, #tpu.memory_space<vmem>>, vector<1x32xf32>
    %c0_32 = arith.constant 0 : index
    %c0_33 = arith.constant 0 : index
    %72 = vector.load %arg12[%c0_32, %c0_33] : memref<1x32xf32, #tpu.memory_space<vmem>>, vector<1x32xf32>
    %cst_34 = arith.constant dense<0.000000e+00> : vector<8xf32>
    %73 = vector.multi_reduction <add>, %70, %cst_34 [1] : vector<8x32xf32> to vector<8xf32>
    %74 = vector.shape_cast %73 : vector<8xf32> to vector<8x1xf32>
    %cst_35 = arith.constant 3.200000e+01 : f32
    %75 = vector.broadcast %cst_35 : f32 to vector<8x1xf32>
    %76 = arith.divf %74, %75 : vector<8x1xf32>
    %77 = vector.broadcast %76 : vector<8x1xf32> to vector<8x32xf32>
    %78 = arith.subf %70, %77 : vector<8x32xf32>
    %79 = arith.mulf %78, %78 : vector<8x32xf32>
    %cst_36 = arith.constant dense<0.000000e+00> : vector<8xf32>
    %80 = vector.multi_reduction <add>, %79, %cst_36 [1] : vector<8x32xf32> to vector<8xf32>
    %81 = vector.shape_cast %80 : vector<8xf32> to vector<8x1xf32>
    %cst_37 = arith.constant 3.200000e+01 : f32
    %82 = vector.broadcast %cst_37 : f32 to vector<8x1xf32>
    %83 = arith.divf %81, %82 : vector<8x1xf32>
    %cst_38 = arith.constant 9.99999974E-6 : f32
    %84 = vector.broadcast %cst_38 : f32 to vector<8x1xf32>
    %85 = arith.addf %83, %84 : vector<8x1xf32>
    %86 = math.rsqrt %85 : vector<8x1xf32>
    %87 = vector.broadcast %86 : vector<8x1xf32> to vector<8x32xf32>
    %88 = arith.mulf %78, %87 : vector<8x32xf32>
    %89 = vector.broadcast %71 : vector<1x32xf32> to vector<8x32xf32>
    %90 = arith.mulf %88, %89 : vector<8x32xf32>
    %91 = vector.broadcast %72 : vector<1x32xf32> to vector<8x32xf32>
    %92 = arith.addf %90, %91 : vector<8x32xf32>
    %93 = arith.truncf %92 : vector<8x32xf32> to vector<8x32xbf16>
    %c0_39 = arith.constant 0 : index
    %c0_40 = arith.constant 0 : index
    %94 = vector.load %arg7[%c0_39, %c0_40] : memref<32x64xbf16, #tpu.memory_space<vmem>>, vector<32x64xbf16>
    %cst_41 = arith.constant dense<0.000000e+00> : vector<8x64xf32>
    %95 = tpu.matmul %93, %94, %cst_41 {dimension_numbers = #tpu.dot_dimension_numbers<[1], [0], [0], [1], [0, 0, 1, 1], [], []>} : vector<8x32xbf16>, vector<32x64xbf16>, vector<8x64xf32> -> vector<8x64xf32>
    %c0_42 = arith.constant 0 : index
    %c0_43 = arith.constant 0 : index
    %96 = vector.load %arg8[%c0_42, %c0_43] : memref<1x64xf32, #tpu.memory_space<vmem>>, vector<1x64xf32>
    %97 = vector.broadcast %96 : vector<1x64xf32> to vector<8x64xf32>
    %98 = arith.addf %95, %97 : vector<8x64xf32>
    %cst_44 = arith.constant 0.000000e+00 : f32
    %99 = vector.broadcast %cst_44 : f32 to vector<8x64xf32>
    %100 = arith.maximumf %98, %99 : vector<8x64xf32>
    %101 = arith.truncf %100 : vector<8x64xf32> to vector<8x64xbf16>
    %c0_45 = arith.constant 0 : index
    %c0_46 = arith.constant 0 : index
    %102 = vector.load %arg9[%c0_45, %c0_46] : memref<64x32xbf16, #tpu.memory_space<vmem>>, vector<64x32xbf16>
    %cst_47 = arith.constant dense<0.000000e+00> : vector<8x32xf32>
    %103 = tpu.matmul %101, %102, %cst_47 {dimension_numbers = #tpu.dot_dimension_numbers<[1], [0], [0], [1], [0, 0, 1, 1], [], []>} : vector<8x64xbf16>, vector<64x32xbf16>, vector<8x32xf32> -> vector<8x32xf32>
    %c0_48 = arith.constant 0 : index
    %c0_49 = arith.constant 0 : index
    %104 = vector.load %arg10[%c0_48, %c0_49] : memref<1x32xf32, #tpu.memory_space<vmem>>, vector<1x32xf32>
    %105 = vector.broadcast %104 : vector<1x32xf32> to vector<8x32xf32>
    %106 = arith.addf %103, %105 : vector<8x32xf32>
    %107 = arith.addf %92, %106 : vector<8x32xf32>
    %c0_50 = arith.constant 0 : index
    %c0_51 = arith.constant 0 : index
    %108 = vector.load %arg13[%c0_50, %c0_51] : memref<1x32xf32, #tpu.memory_space<vmem>>, vector<1x32xf32>
    %c0_52 = arith.constant 0 : index
    %c0_53 = arith.constant 0 : index
    %109 = vector.load %arg14[%c0_52, %c0_53] : memref<1x32xf32, #tpu.memory_space<vmem>>, vector<1x32xf32>
    %cst_54 = arith.constant dense<0.000000e+00> : vector<8xf32>
    %110 = vector.multi_reduction <add>, %107, %cst_54 [1] : vector<8x32xf32> to vector<8xf32>
    %111 = vector.shape_cast %110 : vector<8xf32> to vector<8x1xf32>
    %cst_55 = arith.constant 3.200000e+01 : f32
    %112 = vector.broadcast %cst_55 : f32 to vector<8x1xf32>
    %113 = arith.divf %111, %112 : vector<8x1xf32>
    %114 = vector.broadcast %113 : vector<8x1xf32> to vector<8x32xf32>
    %115 = arith.subf %107, %114 : vector<8x32xf32>
    %116 = arith.mulf %115, %115 : vector<8x32xf32>
    %cst_56 = arith.constant dense<0.000000e+00> : vector<8xf32>
    %117 = vector.multi_reduction <add>, %116, %cst_56 [1] : vector<8x32xf32> to vector<8xf32>
    %118 = vector.shape_cast %117 : vector<8xf32> to vector<8x1xf32>
    %cst_57 = arith.constant 3.200000e+01 : f32
    %119 = vector.broadcast %cst_57 : f32 to vector<8x1xf32>
    %120 = arith.divf %118, %119 : vector<8x1xf32>
    %cst_58 = arith.constant 9.99999974E-6 : f32
    %121 = vector.broadcast %cst_58 : f32 to vector<8x1xf32>
    %122 = arith.addf %120, %121 : vector<8x1xf32>
    %123 = math.rsqrt %122 : vector<8x1xf32>
    %124 = vector.broadcast %123 : vector<8x1xf32> to vector<8x32xf32>
    %125 = arith.mulf %115, %124 : vector<8x32xf32>
    %126 = vector.broadcast %108 : vector<1x32xf32> to vector<8x32xf32>
    %127 = arith.mulf %125, %126 : vector<8x32xf32>
    %128 = vector.broadcast %109 : vector<1x32xf32> to vector<8x32xf32>
    %129 = arith.addf %127, %128 : vector<8x32xf32>
    %c0_59 = arith.constant 0 : index
    %c0_60 = arith.constant 0 : index
    %c0_61 = arith.constant 0 : index
    %130 = vector.load %arg15[%c0_59, %c0_60, %c0_61] : memref<1x8x32xf32, #tpu.memory_space<vmem>>, vector<1x8x32xf32>
    %131 = vector.shape_cast %130 : vector<1x8x32xf32> to vector<8x32xf32>
    %132 = vector.shape_cast %129 : vector<8x32xf32> to vector<1x8x32xf32>
    tpu.vector_store %arg15[%c0_59, %c0_60, %c0_61], %132 {strides = array<i32>} : memref<1x8x32xf32, #tpu.memory_space<vmem>>, vector<1x8x32xf32>,
    return
  }
  func.func @transform_0(%arg0: i32) -> (i32, i32, i32) {
    %c0_i32 = arith.constant 0 : i32
    %c0_i32_0 = arith.constant 0 : i32
    %c0_i32_1 = arith.constant 0 : i32
    return %arg0, %c0_i32, %c0_i32_0 : i32, i32, i32
  }
  func.func @transform_1(%arg0: i32) -> (i32, i32, i32) {
    %c0_i32 = arith.constant 0 : i32
    %c0_i32_0 = arith.constant 0 : i32
    %c0_i32_1 = arith.constant 0 : i32
    return %arg0, %c0_i32, %c0_i32_0 : i32, i32, i32
  }
  func.func @transform_2(%arg0: i32) -> (i32, i32) {
    %c0_i32 = arith.constant 0 : i32
    %c0_i32_0 = arith.constant 0 : i32
    %c0_i32_1 = arith.constant 0 : i32
    return %c0_i32, %c0_i32_0 : i32, i32
  }
  func.func @transform_3(%arg0: i32) -> (i32, i32) {
    %c0_i32 = arith.constant 0 : i32
    %c0_i32_0 = arith.constant 0 : i32
    %c0_i32_1 = arith.constant 0 : i32
    return %c0_i32, %c0_i32_0 : i32, i32
  }
  func.func @transform_4(%arg0: i32) -> (i32, i32) {
    %c0_i32 = arith.constant 0 : i32
    %c0_i32_0 = arith.constant 0 : i32
    %c0_i32_1 = arith.constant 0 : i32
    return %c0_i32, %c0_i32_0 : i32, i32
  }
  func.func @transform_5(%arg0: i32) -> (i32, i32) {
    %c0_i32 = arith.constant 0 : i32
    %c0_i32_0 = arith.constant 0 : i32
    %c0_i32_1 = arith.constant 0 : i32
    return %c0_i32, %c0_i32_0 : i32, i32
  }
  func.func @transform_6(%arg0: i32) -> (i32, i32) {
    %c0_i32 = arith.constant 0 : i32
    %c0_i32_0 = arith.constant 0 : i32
    %c0_i32_1 = arith.constant 0 : i32
    return %c0_i32, %c0_i32_0 : i32, i32
  }
  func.func @transform_7(%arg0: i32) -> (i32, i32) {
    %c0_i32 = arith.constant 0 : i32
    %c0_i32_0 = arith.constant 0 : i32
    %c0_i32_1 = arith.constant 0 : i32
    return %c0_i32, %c0_i32_0 : i32, i32
  }
  func.func @transform_8(%arg0: i32) -> (i32, i32) {
    %c0_i32 = arith.constant 0 : i32
    %c0_i32_0 = arith.constant 0 : i32
    %c0_i32_1 = arith.constant 0 : i32
    return %c0_i32, %c0_i32_0 : i32, i32
  }
  func.func @transform_9(%arg0: i32) -> (i32, i32) {
    %c0_i32 = arith.constant 0 : i32
    %c0_i32_0 = arith.constant 0 : i32
    %c0_i32_1 = arith.constant 0 : i32
    return %c0_i32, %c0_i32_0 : i32, i32
  }
  func.func @transform_10(%arg0: i32) -> (i32, i32) {
    %c0_i32 = arith.constant 0 : i32
    %c0_i32_0 = arith.constant 0 : i32
    %c0_i32_1 = arith.constant 0 : i32
    return %c0_i32, %c0_i32_0 : i32, i32
  }
  func.func @transform_11(%arg0: i32) -> (i32, i32) {
    %c0_i32 = arith.constant 0 : i32
    %c0_i32_0 = arith.constant 0 : i32
    %c0_i32_1 = arith.constant 0 : i32
    return %c0_i32, %c0_i32_0 : i32, i32
  }
  func.func @transform_12(%arg0: i32) -> (i32, i32) {
    %c0_i32 = arith.constant 0 : i32
    %c0_i32_0 = arith.constant 0 : i32
    %c0_i32_1 = arith.constant 0 : i32
    return %c0_i32, %c0_i32_0 : i32, i32
  }
  func.func @transform_13(%arg0: i32) -> (i32, i32) {
    %c0_i32 = arith.constant 0 : i32
    %c0_i32_0 = arith.constant 0 : i32
    %c0_i32_1 = arith.constant 0 : i32
    return %c0_i32, %c0_i32_0 : i32, i32
  }
  func.func @transform_14(%arg0: i32) -> (i32, i32, i32) {
    %c0_i32 = arith.constant 0 : i32
    %c0_i32_0 = arith.constant 0 : i32
    %c0_i32_1 = arith.constant 0 : i32
    return %arg0, %c0_i32, %c0_i32_0 : i32, i32, i32
  }
  func.func @transform_15(%arg0: i32) -> (i32, i32, i32) {
    %c0_i32 = arith.constant 0 : i32
    %c0_i32_0 = arith.constant 0 : i32
    %c0_i32_1 = arith.constant 0 : i32
    return %arg0, %c0_i32, %c0_i32_0 : i32, i32, i32
  }
}

</mosaic_0001>

<bundles_post_ra>
// kernel: transformer_encoder_layer.1
= control target key start
LH: loop header
LB: loop body
LE: loop exit
PB: predicated region body
PF: predicated region fallthrough
CT: control target
= control target key end

     0   :  { %s2237_s0 = inlined_call_operand.vmem [shape: f32[2,8,32], index: 0, kind: input, shape index: {}]   ;;  %s2238_s1 = inlined_call_operand.vmem [shape: f32[2,8,8], index: 1, kind: input, shape index: {}]   ;;  %s2239_s2 = inlined_call_operand.vmem [shape: bf16[32,768], index: 2, kind: input, shape index: {}]   ;;  %s2240_s3 = inlined_call_operand.vmem [shape: f32[1,768], index: 3, kind: input, shape index: {}]   ;;  %s2241_s4 = inlined_call_operand.vmem [shape: bf16[256,32], index: 4, kind: input, shape index: {}]   ;;  %s2242_s5 = inlined_call_operand.vmem [shape: f32[1,32], index: 5, kind: input, shape index: {}]   ;;  %s2243_s6 = inlined_call_operand.vmem [shape: bf16[32,64], index: 6, kind: input, shape index: {}]   ;;  %s2244_s7 = inlined_call_operand.vmem [shape: f32[1,64], index: 7, kind: input, shape index: {}]   ;;  %s2245_s8 = inlined_call_operand.vmem [shape: bf16[64,32], index: 8, kind: input, shape index: {}]   ;;  %s2246_s9 = inlined_call_operand.vmem [shape: f32[1,32], index: 9, kind: input, shape index: {}]   ;;  %s2247_s10 = inlined_call_operand.vmem [shape: f32[1,32], index: 10, kind: input, shape index: {}]   ;;  %s2248_s11 = inlined_call_operand.vmem [shape: f32[1,32], index: 11, kind: input, shape index: {}]   ;;  %s2249_s12 = inlined_call_operand.vmem [shape: f32[1,32], index: 12, kind: input, shape index: {}]   ;;  %s2250_s13 = inlined_call_operand.vmem [shape: f32[1,32], index: 13, kind: input, shape index: {}]   ;;  %s2251_s14 = inlined_call_operand.vmem [shape: f32[2,8,32], index: 14, kind: output, shape index: {0}]   ;;  %s2252_s15 = inlined_call_operand.hbm [shape: f32[2,8,8], index: 15, kind: output, shape index: {1}]  }
   0x1   :  { %2259 = sst [smem:[#allocation10_spill]] %s2237_s0 }
   0x2   :  { %2260 = sst [smem:[#allocation11_spill]] %s2238_s1 }
   0x3   :  { %2261 = sst [smem:[#allocation12_spill]] %s2239_s2 }
   0x4   :  { %21 = vsyncpa [#allocation3], 0 }
   0x5   :  { %23 = vsyncpa [#allocation3 + $0x1], 0  ;;  %s1929_s18 = smov 0   ;;  %s1931_s19 = smov 0  }
   0x6   :  { %s1933_s20 = smov 0   ;;  %s1935_s21 = smov 0  }
   0x7 LB: > { %2262 = sst [smem:[#allocation5_spill]] %s1831_s18  ;;  %s1950_s22 = sadd.s32 4294967295, %s1843_s21   ;;  %s1843_s21 = sphi %s1935_s21, %s2275_s21   ;;  %s1839_s20 = sphi %s1933_s20, %s2277_s20   ;;  %s1835_s19 = sphi %s1931_s19, %s2279_s19   ;;  %s1831_s18 = sphi %s1929_s18, %s2278_s18  }
   0x8   : > { %2263 = sst [smem:[#allocation6_spill]] %s1839_s20  ;;  %s1509_s23 = sadd.s32 4294967294, %s1843_s21  }
   0x9   : > { %s1954_s24 = sadd.s32 1, %s1843_s21   ;;  %s366_s25 = sadd.s32 1, %s1839_s20 }
   0xa   : > { %2264 = sst [smem:[#allocation7_spill]] %s1954_s24  ;;  %s363_s26 = ssub.s32 %s1843_s21, %s1954_s24 }
   0xb   : > { %p376_p0 = scmp.ne.s32.totalorder %s1839_s20, %s1835_s19  ;;  %p364_p1 = scmp.eq.s32.totalorder %s363_s26, 0 }
   0xc   : > { %p377_p2 = scmp.eq.s32.totalorder %s1950_s22, 1  ;;  %p382_p3 = scmp.ne.s32.totalorder %s1835_s19, %s1831_s18 }
   0xd   : > { %p383_p4 = scmp.eq.s32.totalorder %s1509_s23, 1  ;;  %p1512_p7 = scmp.ge.s32.totalorder %s1843_s21, 1 }
   0xe   : > { %s1965_s27 = scalar_select %p364_p1, %s1839_s20, %s366_s25  }
   0xf   : > { %p1967_p5 = por %p377_p2, %p376_p0  ;;  %p1971_p6 = por %p383_p4, %p382_p3 }
  0x10   : > { %2265 = sst [smem:[#allocation8_spill]] %s1965_s27  ;;  %p451_p8 = scmp.lt.s32.totalorder %s1843_s21, 3 }
  0x11   : > { %s2267_s29 = scalar_select %p1971_p6, 1, 0 }
  0x12   : > { %p452_p9 = pnand %p1512_p7, %p451_p8 }
  0x13   : > { %2268 = sst [smem:[#allocation9_spill]] %s2267_s29  ;;  %s2269_s2 = sld [smem:[#allocation12_spill]] (!%p452_p9)  ;;  %v1845_v2 = vmov (!%p452_p9), 0   ;;  %vm626_vm0 = vcmask (!%p452_p9), 261120   ;;  %v1846_v15 = vmov (!%p452_p9), 0.0   ;;  %vm1847_vm1 = vmmov (!%p452_p9), 0  }
  0x14   : > { %455 = sbr.rel (%p452_p9) target bundleno = 2291 (0x8f3), region = 76  ;;  %p506_p10 = scmp.lt.s32.totalorder (!%p452_p9), %s1950_s22, 1  ;;  %662 = vmatprep.mubr.bf16.mxu1 (!%p452_p9), %v1845_v2  ;;  %744 = vmatprep.mubr.bf16.mxu0 (!%p452_p9), %v1845_v2  ;;  %v536_v16 = vlaneseq (!%p452_p9)  ;;  %v534_v19 = vld [vmem:[%s2240_s3] sm:$0x3f] (!%p452_p9)  ;;  %vm813_vm2 = vcmask (!%p452_p9), 1043456   ;;  %vm796_vm3 = vcmask (!%p452_p9), 64512  }
  0x15   : > { %s2270_s0 = sld [smem:[#allocation10_spill]] (!%p452_p9)  ;;  %s2271_s1 = sld [smem:[#allocation11_spill]] (!%p452_p9)  ;;  %vm1318_vm4 = vcmask (!%p452_p9), 523264  }
  0x16   : > { %v537_v17 = vshrl.u32 (!%p452_p9), %v536_v16, 7  ;;  %s2258_s23 = sand.u32 (!%p452_p9), 1, %s1835_s19  }
  0x17   : > { %s2082_s25 = sshll.u32 (!%p452_p9), %s2258_s23, 3 }
  0x18   : > { %v542_v18 = vsub.s32 (!%p452_p9), 1, %v537_v17  ;;  %v558_v20 = vsub.s32 (!%p452_p9), 5, %v537_v17  ;;  %v554_v22 = vsub.s32 (!%p452_p9), 4, %v537_v17  ;;  %v538_v23 = vsub.s32 (!%p452_p9), 0, %v537_v17  ;;  %s505_s16 = scalar_lea.vmem (!%p452_p9), [#allocation2], %s2082_s25 }
  0x19   : > { %v1729_v0 = vld [vmem:[%s2269_s2 + $0x4] ss:$24 sps:$4 sm:$0xff] (!%p452_p9)   ;;  %v1731_v1 = vld [vmem:[%s2269_s2] ss:$24 sps:$4 sm:$0xff] (!%p452_p9)   ;;  %v1732_v3 = vld [vmem:[%s2269_s2 + $0x34] ss:$24 sps:$4 sm:$0xff] (!%p452_p9)  }
  0x1a   : > { %630 = vmatprep.subr.bf16.mxu1 (!%p452_p9), %v1729_v0  ;;  %v1734_v4 = vld [vmem:[%s2269_s2 + $0x30] ss:$24 sps:$4 sm:$0xff] (!%p452_p9)   ;;  %v1735_v5 = vld [vmem:[%s2269_s2 + $0x14] ss:$24 sps:$4 sm:$0xff] (!%p452_p9)   ;;  %v1738_v7 = vld [vmem:[%s2269_s2 + $0x44] ss:$24 sps:$4 sm:$0xff] (!%p452_p9)   ;;  %v543_v21 = vrot.slane (!%p452_p9), %v534_v19, %v542_v18  ;;  %v559_v26 = vrot.slane (!%p452_p9), %v534_v19, %v558_v20  ;;  %v555_v30 = vrot.slane (!%p452_p9), %v534_v19, %v554_v22  ;;  %v539_v31 = vrot.slane (!%p452_p9), %v534_v19, %v538_v23 }
  0x1b   : > { %s507_s30 = scalar_select %p506_p10, %s1950_s22, 1  ;;  %631 = vmatpush1.bf16.msra.mxu1 %v1731_v1  ;;  %v1737_v6 = vld [vmem:[%s2269_s2 + $0x10] ss:$24 sps:$4 sm:$0xff]   ;;  %712 = vmatprep.subr.bf16.mxu0 %v1735_v5  ;;  %v1740_v9 = vld [vmem:[%s2269_s2 + $0x40] ss:$24 sps:$4 sm:$0xff]   ;;  %v546_v27 = vsub.s32 2, %v537_v17 }
  0x1c   : > { %632 = vmatprep.subr.bf16.mxu1 %v1732_v3  ;;  %713 = vmatpush1.bf16.msra.mxu0 %v1737_v6  ;;  %v1743_v10 = vld [vmem:[%s2269_s2 + $0xc] ss:$24 sps:$4 sm:$0xff]   ;;  %v1741_v12 = vld [vmem:[%s2269_s2 + $0x8] ss:$24 sps:$4 sm:$0xff]   ;;  %v1746_v13 = vld [vmem:[%s2269_s2 + $0x3c] ss:$24 sps:$4 sm:$0xff]  }
  0x1d   : > { %s1997_s29 = sshll.u32 %s507_s30, 3  ;;  %714 = vmatprep.subr.bf16.mxu0 %v1738_v7  ;;  %v1744_v14 = vld [vmem:[%s2269_s2 + $0x38] ss:$24 sps:$4 sm:$0xff]   ;;  %v547_v38 = vrot.slane %v534_v19, %v546_v27  ;;  %v550_v39 = vsub.s32 3, %v537_v17  ;;  %v1749_v18 = vld [vmem:[%s2241_s4 + $0x40] sm:$0xff]   ;;  %s1566_s30 = sshll.u32 %s1950_s22, 7 }
  0x1e   : > { %s509_s26 = scalar_lea.vmem %s2270_s0, %s1997_s29  ;;  %s513_s18 = scalar_lea.vmem %s2271_s1, %s1997_s29  ;;  %v1753_v20 = vld [vmem:[%s2241_s4 + $0x50] sm:$0xff]   ;;  %v1757_v22 = vld [vmem:[%s2241_s4 + $0x60] sm:$0xff]  }
  0x1f   : > { %v2006_v8 = vld [vmem:[%s509_s26] sm:$0xff]  ;;  %633 = vmatpush1.bf16.msra.mxu1 %v1734_v4  ;;  %v551_v47 = vrot.slane %v534_v19, %v550_v39  ;;  %v1751_v19 = vld [vmem:[%s2241_s4 + $0x48] sm:$0xff]   ;;  %v1758_v39 = vld [vmem:[%s2241_s4 + $0x30] sm:$0xff]   ;;  %s2188_s27 = scalar_lea.hbm %s2252_s15, %s1566_s30  ;;  %s2272_s26 = sand.u32 1, %s1835_s19  }
  0x20   : > { %v521_v11 = vpack.c.bf16 %v2006_v8, %v2006_v8  ;;  %671 = vmatprep.subr.bf16.mxu1 %v1743_v10  ;;  %715 = vmatpush1.bf16.msra.mxu0 %v1740_v9  ;;  %v520_v57 = vld [vmem:[%s513_s18] sm:$0xff]  ;;  %s1414_s18 = sshll.u32 %s505_s16, 4  ;;  %s1398_s24 = scalar_lea.sflag [#allocation3], %s2272_s26  ;;  %s1415_s18 = int_to_ptr.vmem [resolvable:$true] %s1414_s18 }
  0x21   : > { %1609 = vmatprep.subr.bf16.mxu0 %v1846_v15  ;;  %s1781_s17 = scalar_lea.vmem %s1415_s18, 128  ;;  %s1848_s0 = smov [#allocation2]  }
  0x22   : > { %1529 = vmatmul.mubr.msk.bf16.vlgmr.msra.gmra.mrb[0].mxu1 %vm626_vm0, %v521_v11  ;;  %p1782_p11 = scmp.ne.s32.totalorder %s1415_s18, %s1781_s17  ;;  %s1785_s1 = sshll.u32 %s1848_s0, 4  ;;  %s1786_s1 = int_to_ptr.vmem [resolvable:$false] %s1785_s1 }
  0x23   : > { %672 = vmatpush1.bf16.msra.mxu1 %v1741_v12  ;;  %703 = vmatprep.mubr.bf16.mxu1 %v1845_v2  ;;  %s1787_s2 = scalar_lea.vmem %s1786_s1, 256  ;;  %p1788_p0 = scmp.lt.s32.totalorder %s1415_s18, %s1786_s1 }
  0x24   : > { %673 = vmatprep.subr.bf16.mxu1 %v1746_v13  ;;  %1531 = vmatmul.mubr.msk.bf16.vlgmr.msra.gmra.mrb[0].mxu0 %vm626_vm0, %v521_v11  ;;  %p1783_p12 = pnand %p1782_p11, %p1967_p5  ;;  %p1789_p1 = scmp.lt.s32.totalorder %s1787_s2, %s1781_s17 }
  0x25   : > { %1611 = vmatprep.mubr.msk.bf16.mxu0 %vm1847_vm1, %v1846_v15 }
  0x26   : > { %p1784_p13 = pneg %p1783_p12  ;;  %p1790_p2 = por %p1789_p1, %p1788_p0 }
  0x27   : > { %674 = vmatpush1.bf16.msra.mxu1 %v1744_v14 }
  0x28   : > { %1603 = vmatprep.subr.bf16.mxu1 %v1846_v15  ;;  %p1791_p3 = pnand %p1790_p2, %p1784_p13 }
  0x2a   : > { %1530 = vmatmul.mubr.msk.bf16.vlgmr.msra.gmra.mrb[4].mxu1 %vm626_vm0, %v521_v11 }
  0x2b   : > { %1605 = vmatprep.mubr.msk.bf16.mxu1 %vm1847_vm1, %v1846_v15 }
  0xf5   : > { %v664_v24 = vpop.f32.mrb[0].mxu1 }
  0xf6   : > { %v666_v25 = vpop.f32.mrb[1].mxu1  ;;  %v665_v42 = vadd.f32 %v664_v24, %v539_v31 }
  0xf7   : > { %v667_v28 = vadd.f32 %v666_v25, %v543_v21  ;;  %v668_v29 = vpop.f32.mrb[2].mxu1  ;;  %v746_v33 = vpop.f32.mrb[0].mxu0  ;;  %v1755_v21 = vld [vmem:[%s2241_s4 + $0x58] sm:$0xff]  }
  0xf8   : > { %v669_v32 = vpop.f32.mrb[3].mxu1  ;;  %v748_v35 = vpop.f32.mrb[1].mxu0  ;;  %v747_v40 = vadd.f32 %v746_v33, %v555_v30  ;;  %v753_v51 = vpack.c.bf16 %v665_v42, %v665_v42  ;;  %v1747_v30 = vld [vmem:[%s2241_s4] sm:$0xff]   ;;  %v1761_v42 = vld [vmem:[%s2241_s4 + $0x70] sm:$0xff]  }
  0xf9   : > { %v754_v34 = vpack.c.bf16 %v667_v28, %v667_v28  ;;  %v749_v36 = vadd.f32 %v748_v35, %v559_v26  ;;  %v750_v37 = vpop.f32.mrb[2].mxu0  ;;  %v1750_v35 = vld [vmem:[%s2241_s4 + $0x10] sm:$0xff]  }
  0xfa   : > { %v751_v41 = vpop.f32.mrb[3].mxu0  ;;  %v875_v49 = vpack.c.bf16 %v747_v40, %v747_v40  ;;  %v1754_v37 = vld [vmem:[%s2241_s4 + $0x20] sm:$0xff]   ;;  %v1759_v40 = vld [vmem:[%s2241_s4 + $0x68] sm:$0xff]  }
  0xfb   : > { %1604 = vmatpush3.bf16.xpose.msra.mxu1 %v754_v34  ;;  %v876_v43 = vpack.c.bf16 %v749_v36, %v749_v36  ;;  %v1748_v34 = vld [vmem:[%s2241_s4 + $0x8] sm:$0xff]   ;;  %v1752_v36 = vld [vmem:[%s2241_s4 + $0x18] sm:$0xff]  }
  0xfc   : > { %1615 = vmatprep.subr.bf16.mxu1 %v1846_v15  ;;  %v1760_v41 = vld [vmem:[%s2241_s4 + $0x38] sm:$0xff]  }
  0xfd   : > { %v705_v44 = vpop.f32.mrb[4].mxu1  ;;  %v2038_v45 = vsel %vm813_vm2, %v876_v43, 0  ;;  %v1762_v43 = vld [vmem:[%s2241_s4 + $0x78] sm:$0xff]  }
  0xfe   : > { %v706_v46 = vadd.f32 %v705_v44, %v547_v38  ;;  %v707_v48 = vpop.f32.mrb[5].mxu1  ;;  %v1756_v38 = vld [vmem:[%s2241_s4 + $0x28] sm:$0xff]  }
  0xff   : > { %v709_v50 = vpop.f32.mrb[6].mxu1  ;;  %v708_v55 = vadd.f32 %v707_v48, %v551_v47 }
 0x100   : > { %v755_v52 = vpack.c.bf16 %v706_v46, %v706_v46  ;;  %v710_v53 = vpop.f32.mrb[7].mxu1 }
 0x101   : > { %v874_v56 = vpack.c.bf16 %v708_v55, %v708_v55 }
 0x102   : > { %v815_v54 = vsel %vm813_vm2, %v755_v52, 0  ;;  %1606 = vmatmul.mubr.bf16.vlgmr.msra.gmra.mrb[8].mxu1 %v753_v51 }
 0x103   : > { %1616 = vmatpush3.bf16.xpose.msra.mxu1 %v875_v49  ;;  %1617 = vmatprep.mubr.msk.bf16.mxu1 %vm1847_vm1, %v1846_v15 }
 0x104   : > { %1610 = vmatpush3.bf16.msra.mxu0 %v815_v54  ;;  %1627 = vmatprep.subr.bf16.mxu1 %v1846_v15 }
 0x105   : > { %1621 = vmatprep.subr.bf16.mxu0 %v1846_v15 }
 0x10a   : > { %1618 = vmatmul.mubr.bf16.vlgmr.msra.gmra.mrb[12].mxu1 %v874_v56 }
 0x10b   : > { %1643 = vmatprep.mubr.msk.bf16.mxu1 %vm1847_vm1, %v1846_v15  ;;  %1628 = vmatpush3.bf16.msra.mxu1 %v1749_v18 }
 0x10c   : > { %1629 = vmatprep.subr.bf16.mxu1 %v1846_v15 }
 0x10f   : > { %1630 = vmatpush3.bf16.msra.mxu1 %v1751_v19  ;;  %v1552_v19 = vld [vmem:[%s2248_s11] ss:$0 sm:$0xff] }
 0x110   : > { %1631 = vmatprep.subr.bf16.mxu1 %v1846_v15 }
 0x113   : > { %1632 = vmatpush3.bf16.msra.mxu1 %v1753_v20 }
 0x114   : > { %1633 = vmatprep.subr.bf16.mxu1 %v1846_v15 }
 0x117   : > { %1634 = vmatpush3.bf16.msra.mxu1 %v1755_v21 }
 0x118   : > { %1635 = vmatprep.subr.bf16.mxu1 %v1846_v15 }
 0x11b   : > { %1636 = vmatpush3.bf16.msra.mxu1 %v1757_v22 }
 0x11c   : > { %1637 = vmatprep.subr.bf16.mxu1 %v1846_v15 }
 0x11f   : > { %1638 = vmatpush3.bf16.msra.mxu1 %v1759_v40 }
 0x120   : > { %1639 = vmatprep.subr.bf16.mxu1 %v1846_v15 }
 0x123   : > { %1640 = vmatpush3.bf16.msra.mxu1 %v1761_v42 }
 0x124   : > { %1641 = vmatprep.subr.bf16.mxu1 %v1846_v15 }
 0x127   : > { %1642 = vmatpush3.bf16.msra.mxu1 %v1762_v43 }
 0x128   : > { %1667 = vmatprep.subr.bf16.mxu1 %v1846_v15 }
 0x1d5   : > { %v790_v58 = vpop.f32.mrb[8].mxu1 }
 0x1d6   : > { %v791_v59 = vadd.f32 %v790_v58, %v520_v57  ;;  %v1607_v60 = vpop.f32.mrb[9].mxu1 }
 0x1d7   : > { %v793_v61 = vpop.f32.mrb[10].mxu1 }
 0x1d8   : > { %v1608_v62 = vpop.f32.mrb[11].mxu1  ;;  %v797_v63 = vsel %vm796_vm3, %v791_v59, -inf }
 0x1d9   : > { %798 = vmax.xlane.f32.xlu0 %v797_v63 }
 0x1dd   : > { %v911_v0 = vpop.f32.mrb[12].mxu1 }
 0x1de   : > { %v912_v1 = vadd.f32 %v911_v0, %v520_v57  ;;  %v1619_v2 = vpop.f32.mrb[13].mxu1 }
 0x1df   : > { %v914_v3 = vpop.f32.mrb[14].mxu1 }
 0x1e0   : > { %v1620_v4 = vpop.f32.mrb[15].mxu1  ;;  %v917_v5 = vsel %vm796_vm3, %v912_v1, -inf }
 0x1e1   : > { %918 = vmax.xlane.f32.xlu0 %v917_v5 }
 0x266   : > { %v799_v6 = vpop.xlane.xlu0 %798 }
 0x267   : > { %v800_v7 = vsub.f32 %v791_v59, %v799_v6  ;;  %v1550_v59 = vld [vmem:[%s2242_s5] ss:$0 sm:$0xff] }
 0x269   : > { %v801_v9 = vmul.f32 1.442695, %v800_v7 }
 0x26b   : > { %1769 = vpow2.f32 %v801_v9  ;;  %v1763_v9 = vld [vmem:[%s2243_s6] sm:$0xff]  }
 0x26e   : > { %v919_v10 = vpop.xlane.xlu0 %918 }
 0x26f   : > { %v920_v11 = vsub.f32 %v912_v1, %v919_v10  ;;  %v1764_v10 = vld [vmem:[%s2243_s6 + $0x8] sm:$0xff]  }
 0x271   : > { %v921_v12 = vmul.f32 1.442695, %v920_v11  ;;  %v1766_v11 = vld [vmem:[%s2245_s8 + $0x8] sm:$0xff]  }
 0x273   : > { %1771 = vpow2.f32 %v921_v12 }
 0x275   : > { %v1770_v13 = vpop.eup %1769 }
 0x276   : > { %v803_v14 = vsel %vm796_vm3, %v1770_v13, 0.0 }
 0x277   : > { %804 = vadd.xlane.f32.xlu1 %v803_v14 }
 0x27d   : > { %v1772_v16 = vpop.eup %1771 }
 0x27e   : > { %v923_v17 = vsel %vm796_vm3, %v1772_v16, 0.0 }
 0x27f   : > { %924 = vadd.xlane.f32.xlu1 %v923_v17  ;;  %v1551_v17 = vld [vmem:[%s2247_s10] ss:$0 sm:$0xff] }
 0x304   : > { %v805_v23 = vpop.xlane.xlu1 %804 }
 0x305   : > { %1773 = vrcp.f32 %v805_v23  ;;  %v1767_v23 = vld [vmem:[%s2245_s8 + $0x10] sm:$0xff]  }
 0x30c   : > { %v925_v24 = vpop.xlane.xlu1 %924 }
 0x30d   : > { %1775 = vrcp.f32 %v925_v24  ;;  %v1768_v24 = vld [vmem:[%s2245_s8 + $0x18] sm:$0xff]  }
 0x30f   : > { %v1774_v25 = vpop.eup %1773 }
 0x310   : > { %v807_v26 = vmul.f32 %v1774_v25, %v1770_v13  ;;  %v1553_v25 = vld [vmem:[%s2244_s7] ss:$0 sm:$0xff] }
 0x312   : > { %v809_v27 = vpack.c.bf16 %v807_v26, %v807_v26 }
 0x314   : > { %1612 = vmatmul.mubr.msk.bf16.vlgmr.msra.gmra.mrb[4].mxu0 %vm796_vm3, %v809_v27 }
 0x315   : > { %1622 = vmatpush3.bf16.msra.mxu0 %v2038_v45  ;;  %1623 = vmatprep.mubr.msk.bf16.mxu0 %vm1847_vm1, %v1846_v15 }
 0x316   : > { %1647 = vmatprep.subr.bf16.mxu0 %v1846_v15 }
 0x317   : > { %v1776_v28 = vpop.eup %1775 }
 0x318   : > { %v927_v29 = vmul.f32 %v1776_v28, %v1772_v16 }
 0x31a   : > { %v929_v31 = vpack.c.bf16 %v927_v29, %v927_v29  ;;  %v928_v32 = vadd.f32 %v927_v29, %v807_v26 }
 0x31c   : > { %1624 = vmatmul.mubr.msk.bf16.vlgmr.msra.gmra.mrb[8].mxu0 %vm796_vm3, %v929_v31  ;;  %v1177_v33 = vmul.f32 0.5, %v928_v32 }
 0x31d   : > { %1648 = vmatpush3.bf16.msra.mxu0 %v1747_v30  ;;  %1663 = vmatprep.mubr.msk.bf16.mxu0 %vm1847_vm1, %v1846_v15 }
 0x31e   : > { %1649 = vmatprep.subr.bf16.mxu0 %v1846_v15  ;;  %1178 = vst.msk [vmem:[%s505_s16] sm:$0xff] %vm796_vm3, %v1177_v33 }
 0x321   : > { %1650 = vmatpush3.bf16.msra.mxu0 %v1748_v34 }
 0x322   : > { %1651 = vmatprep.subr.bf16.mxu0 %v1846_v15 }
 0x325   : > { %1652 = vmatpush3.bf16.msra.mxu0 %v1750_v35 }
 0x326   : > { %1653 = vmatprep.subr.bf16.mxu0 %v1846_v15 }
 0x329   : > { %1654 = vmatpush3.bf16.msra.mxu0 %v1752_v36 }
 0x32a   : > { %1655 = vmatprep.subr.bf16.mxu0 %v1846_v15 }
 0x32d   : > { %1656 = vmatpush3.bf16.msra.mxu0 %v1754_v37 }
 0x32e   : > { %1657 = vmatprep.subr.bf16.mxu0 %v1846_v15 }
 0x331   : > { %1658 = vmatpush3.bf16.msra.mxu0 %v1756_v38 }
 0x332   : > { %1659 = vmatprep.subr.bf16.mxu0 %v1846_v15 }
 0x335   : > { %1660 = vmatpush3.bf16.msra.mxu0 %v1758_v39 }
 0x336   : > { %1661 = vmatprep.subr.bf16.mxu0 %v1846_v15 }
 0x339   : > { %1662 = vmatpush3.bf16.msra.mxu0 %v1760_v41 }
 0x33a   : > { %1675 = vmatprep.subr.bf16.mxu0 %v1846_v15 }
 0x3e7   : > { %v851_v44 = vpop.f32.mrb[4].mxu0 }
 0x3e8   : > { %v857_v45 = vpack.c.bf16 %v851_v44, %v851_v44  ;;  %v1613_v46 = vpop.f32.mrb[5].mxu0 }
 0x3e9   : > { %v854_v47 = vpop.f32.mrb[6].mxu0 }
 0x3ea   : > { %v1614_v48 = vpop.f32.mrb[7].mxu0  ;;  %1664 = vmatmul.mubr.bf16.vlgmr.msra.gmra.mrb[12].mxu0 %v857_v45 }
 0x3eb   : > { %1683 = vmatprep.mubr.msk.bf16.mxu0 %vm1847_vm1, %v1846_v15 }
 0x3ef   : > { %v970_v49 = vpop.f32.mrb[8].mxu0 }
 0x3f0   : > { %v976_v50 = vpack.c.bf16 %v970_v49, %v970_v49  ;;  %v1625_v51 = vpop.f32.mrb[9].mxu0 }
 0x3f1   : > { %v973_v52 = vpop.f32.mrb[10].mxu0 }
 0x3f2   : > { %v1626_v53 = vpop.f32.mrb[11].mxu0  ;;  %1644 = vmatmul.mubr.bf16.vlgmr.msra.gmra.mrb[16].mxu1 %v976_v50 }
 0x3f3   : > { %1671 = vmatprep.mubr.msk.bf16.mxu1 %vm1847_vm1, %v1846_v15  ;;  %1668 = vmatpush3.bf16.msra.mxu1 %v1763_v9 }
 0x3f4   : > { %1669 = vmatprep.subr.bf16.mxu1 %v1846_v15 }
 0x3f7   : > { %1670 = vmatpush3.bf16.msra.mxu1 %v1764_v10 }
 0x4bd   : > { %v1163_v54 = vpop.f32.mrb[12].mxu0 }
 0x4be   : > { %v1665_v55 = vpop.f32.mrb[13].mxu0 }
 0x4bf   : > { %v1166_v56 = vpop.f32.mrb[14].mxu0 }
 0x4c0   : > { %v1666_v57 = vpop.f32.mrb[15].mxu0 }
 0x4c5   : > { %v1075_v58 = vpop.f32.mrb[16].mxu1 }
 0x4c6   : > { %v1164_v60 = vadd.f32 %v1163_v54, %v1075_v58  ;;  %v1645_v61 = vpop.f32.mrb[17].mxu1 }
 0x4c7   : > { %v1078_v62 = vpop.f32.mrb[18].mxu1 }
 0x4c8   : > { %v1176_v63 = vadd.f32 %v1550_v59, %v1164_v60  ;;  %v1646_v0 = vpop.f32.mrb[19].mxu1 }
 0x4ca   : > { %v1179_v1 = vadd.f32 %v1176_v63, %v2006_v8  ;;  %v1765_v8 = vld [vmem:[%s2245_s8] sm:$0xff]  }
 0x4cb   : > { %1676 = vmatpush3.bf16.msra.mxu0 %v1765_v8 }
 0x4cc   : > { %v1182_v2 = vsel %vm626_vm0, %v1179_v1, 0.0  ;;  %1677 = vmatprep.subr.bf16.mxu0 %v1846_v15 }
 0x4cd   : > { %1183 = vadd.xlane.f32.xlu0 %v1182_v2 }
 0x4cf   : > { %1678 = vmatpush3.bf16.msra.mxu0 %v1766_v11 }
 0x4d0   : > { %1679 = vmatprep.subr.bf16.mxu0 %v1846_v15 }
 0x4d3   : > { %1680 = vmatpush3.bf16.msra.mxu0 %v1767_v23 }
 0x4d4   : > { %1681 = vmatprep.subr.bf16.mxu0 %v1846_v15  ;;  %v1557_v15 = vld [vmem:[%s2246_s9] ss:$0 sm:$0xff] }
 0x4d7   : > { %1682 = vmatpush3.bf16.msra.mxu0 %v1768_v24 }
 0x55a   : > { %v1184_v3 = vpop.xlane.xlu0 %1183 }
 0x55b   : > { %v1186_v4 = vmul.f32 0.03125, %v1184_v3 }
 0x55d   : > { %v1187_v5 = vsub.f32 %v1179_v1, %v1186_v4 }
 0x55f   : > { %v1188_v6 = vmul.f32 %v1187_v5, %v1187_v5 }
 0x561   : > { %v1189_v7 = vsel %vm626_vm0, %v1188_v6, 0.0 }
 0x562   : > { %1190 = vadd.xlane.f32.xlu1 %v1189_v7 }
 0x5ef   : > { %v1191_v12 = vpop.xlane.xlu1 %1190 }
 0x5f0   : > { %v1192_v13 = vmul.f32 0.03125, %v1191_v12 }
 0x5f2   : > { %v1193_v14 = vadd.f32 1e-05, %v1192_v13 }
 0x5f4   : > { %1777 = vrsqrt.f32 %v1193_v14 }
 0x5fe   : > { %v1778_v16 = vpop.eup %1777 }
 0x5ff   : > { %v1195_v18 = vmul.f32 %v1778_v16, %v1187_v5 }
 0x601   : > { %v1202_v20 = vmul.f32 %v1551_v17, %v1195_v18 }
 0x603   : > { %v1209_v21 = vadd.f32 %v1552_v19, %v1202_v20 }
 0x605   : > { %v1210_v22 = vpack.c.bf16 %v1209_v21, %v1209_v21 }
 0x607   : > { %1672 = vmatmul.mubr.msk.bf16.vlgmr.msra.gmra.mrb[20].mxu1 %vm626_vm0, %v1210_v22 }
 0x6da   : > { %v1271_v26 = vpop.f32.mrb[20].mxu1 }
 0x6db   : > { %v1272_v27 = vadd.f32 %v1553_v25, %v1271_v26  ;;  %v1673_v28 = vpop.f32.mrb[21].mxu1 }
 0x6dc   : > { %v1274_v29 = vpop.f32.mrb[22].mxu1 }
 0x6dd   : > { %v1277_v30 = vmax.f32 %v1272_v27, 0.0  ;;  %v1674_v31 = vpop.f32.mrb[23].mxu1 }
 0x6df   : > { %v1278_v32 = vpack.c.bf16 %v1277_v30, %v1277_v30 }
 0x6e1   : > { %1684 = vmatmul.mubr.msk.bf16.vlgmr.msra.gmra.mrb[16].mxu0 %vm1318_vm4, %v1278_v32 }
 0x7b4   : > { %v1356_v33 = vpop.f32.mrb[16].mxu0 }
 0x7b5   : > { %v1357_v34 = vadd.f32 %v1557_v15, %v1356_v33  ;;  %v1685_v35 = vpop.f32.mrb[17].mxu0 }
 0x7b6   : > { %v1359_v36 = vpop.f32.mrb[18].mxu0 }
 0x7b7   : > { %v1686_v37 = vpop.f32.mrb[19].mxu0  ;;  %v1362_v38 = vadd.f32 %v1357_v34, %v1209_v21 }
 0x7b9   : > { %v1365_v39 = vsel %vm626_vm0, %v1362_v38, 0.0 }
 0x7ba   : > { %1366 = vadd.xlane.f32.xlu0 %v1365_v39 }
 0x847   : > { %v1367_v40 = vpop.xlane.xlu0 %1366 }
 0x848   : > { %v1368_v41 = vmul.f32 0.03125, %v1367_v40 }
 0x84a   : > { %v1369_v42 = vsub.f32 %v1362_v38, %v1368_v41 }
 0x84c   : > { %v1370_v43 = vmul.f32 %v1369_v42, %v1369_v42 }
 0x84e   : > { %v1371_v44 = vsel %vm626_vm0, %v1370_v43, 0.0 }
 0x84f   : > { %1372 = vadd.xlane.f32.xlu1 %v1371_v44 }
 0x850   : > { %1794 = shalt.err (!%p1791_p3)
}
 0x851   : > { %s1795_s22 = scalar_lea.hbm %s2188_s27, 128  ;;  %s1799_s0 = scalar_lea.hbm %s2252_s15, 256 }
 0x852   : > { %p1796_p4 = scmp.ne.s32.totalorder %s2188_s27, %s1795_s22  ;;  %p1800_p9 = scmp.lt.u32.totalorder %s2188_s27, %s2252_s15 }
 0x853   : > { %p1801_p10 = scmp.lt.u32.totalorder %s1799_s0, %s1795_s22  ;;  %p1803_p12 = scmp.lt.u32.totalorder %s1795_s22, %s2188_s27 }
 0x854   : > { %p1797_p7 = pnand %p1796_p4, %p1967_p5 }
 0x855   : > { %p1802_p11 = por %p1801_p10, %p1800_p9 }
 0x856   : > { %p1798_p8 = pneg %p1797_p7 }
 0x857   : > { %p1804_p13 = por %p1803_p12, %p1802_p11 }
 0x859   : > { %p1805_p0 = pnand %p1804_p13, %p1798_p8 }
 0x85b   : > { %1808 = shalt.err (!%p1805_p0)
}
 0x85c   : > { %1687 = dma.vmem_to_hbm [thread:$0]  (%p1967_p5), %s1415_s18, 128, %s2188_s27, %s1398_s24   ;;  %v1563_v49 = vld [vmem:[%s2249_s12] ss:$0 sm:$0xff] }
 0x85d   : > { %v1564_v51 = vld [vmem:[%s2250_s13] ss:$0 sm:$0xff]  ;;  %s517_s22 = scalar_lea.vmem %s2251_s14, %s1997_s29 }
 0x8dc   : > { %v1373_v45 = vpop.xlane.xlu1 %1372 }
 0x8dd   : > { %v1374_v46 = vmul.f32 0.03125, %v1373_v45 }
 0x8df   : > { %v1375_v47 = vadd.f32 1e-05, %v1374_v46 }
 0x8e1   : > { %1779 = vrsqrt.f32 %v1375_v47 }
 0x8eb   : > { %v1780_v48 = vpop.eup %1779 }
 0x8ec   : > { %v1377_v50 = vmul.f32 %v1780_v48, %v1369_v42 }
 0x8ee   : > { %v1384_v52 = vmul.f32 %v1563_v49, %v1377_v50 }
 0x8f0   : > { %v1391_v53 = vadd.f32 %v1564_v51, %v1384_v52 }
 0x8f2   : > { %1392 = vst.msk [vmem:[%s517_s22] sm:$0xff] %vm626_vm0, %v1391_v53 }
 0x8f3 PF: > { %s2273_s18 = sld [smem:[#allocation5_spill]]  ;;  %p1693_p5 = scmp.ge.s32.totalorder %s1843_s21, 2 }
 0x8f5   : > { %p1690_p1 = pnand %p1693_p5, %p1971_p6 }
 0x8f9   : > { %s1433_s24 = sand.u32 1, %s2273_s18  }
 0x8fa   : > { %s1434_s25 = scalar_lea.sflag [#allocation3], %s1433_s24 }
 0x8fb   : > { %1826 = dma.done.wait (!%p1690_p1), %s1434_s25, 128  }
 0x8fc   : > { %1828 = vsyncadd (!%p1690_p1), %s1434_s25, 4294967168  ;;  %s2275_s21 = sld [smem:[#allocation7_spill]]  ;;  %s2276_s16 = sld [smem:[#allocation6_spill]] }
 0x8fd   : > { %s2277_s20 = sld [smem:[#allocation8_spill]]  ;;  %s2278_s18 = smov %s1835_s19 }
 0x902   : > { %p26_p2 = scmp.ge.s32.totalorder %s2275_s21, 4   ;;  %s2279_s19 = smov %s2276_s16 }
 0x904   :  { %28 = sbr.rel (!%p26_p2) target bundleno = 7 (0x7), region = 126 }
 0x90b   :  { %1439 = vsyncpa [#allocation3], 1 }
 0x90c   :  { %1441 = vsyncpa [#allocation3 + $0x1], 1 }

</bundles_post_ra>
